<compile_context>
chip_gen: v6e
topology: v6e:2x2x1
jax: 0.10.0
libtpu: 0.0.40
codegen_flags: <defaults>
</compile_context>

<pallas_src>
import jax
import jax.numpy as jnp
from jax.experimental import pallas as pl
from jax.experimental.pallas import tpu as pltpu

# Module dimensions (fixed by the PyTorch spec).
BATCH = 3          # param is (3, 4) and is added element-wise to x -> x is (3, 4)
IN_FEATURES = 4
OUT_FEATURES = 5

# One lane-dense f32 vreg tile.
SUBLANES = 8
LANES = 128


def m_kernel(x_ref, w_ref, c_ref, o_ref):
    """clamp(x @ W^T + c, 0, 1) on a single (8, 128) padded f32 tile.

    x_ref: (8, 128) f32, x in [:BATCH, :IN_FEATURES], zeros elsewhere
    w_ref: (8, 128) f32, W^T (IN_FEATURES, OUT_FEATURES) in the top-left corner
    c_ref: (8, 128) f32, (param @ W^T + bias) in [:BATCH, :OUT_FEATURES]
    o_ref: (8, 128) f32 output tile
    """
    x = x_ref[...]            # (8, 128)
    w = w_ref[...]            # (8, 128)
    acc = c_ref[...]          # start from the folded constant (param @ W^T + b)
    # Static 4-term unroll: pure VPU broadcast multiply-adds, no MXU traffic.
    for k in range(IN_FEATURES):
        acc = acc + x[:, k:k + 1] * w[k:k + 1, :]
    # Fused clamp; single unmasked lane-dense store.
    o_ref[...] = jnp.minimum(jnp.maximum(acc, 0.0), 1.0)


def m_forward(x, param, weight, bias):
    """Forward pass of M.

    x:      (3, 4)  activation
    param:  (3, 4)  learnable parameter (added to x)
    weight: (5, 4)  nn.Linear weight (PyTorch layout: (out_features, in_features))
    bias:   (5,)    nn.Linear bias
    returns (3, 5)  clamp((x + param) @ weight^T + bias, 0, 1)
    """
    x = x.astype(jnp.float32)
    param = param.astype(jnp.float32)
    weight = weight.astype(jnp.float32)
    bias = bias.astype(jnp.float32)

    w_t = weight.T                                   # (4, 5)
    # Algebraic fold: (x + param) @ W^T + b == x @ W^T + (param @ W^T + b).
    # param / W / b are parameters, so XLA constant-folds this per step.
    c = param @ w_t + bias[None, :]                  # (3, 5)

    # Zero-pad everything into a single lane-dense (8, 128) tile.
    x_p = jnp.zeros((SUBLANES, LANES), jnp.float32).at[:BATCH, :IN_FEATURES].set(x)
    w_p = jnp.zeros((SUBLANES, LANES), jnp.float32).at[:IN_FEATURES, :OUT_FEATURES].set(w_t)
    c_p = jnp.zeros((SUBLANES, LANES), jnp.float32).at[:BATCH, :OUT_FEATURES].set(c)

    out_p = pl.pallas_call(
        m_kernel,
        out_shape=jax.ShapeDtypeStruct((SUBLANES, LANES), jnp.float32),
        # Grid-less single invocation; full arrays resident in VMEM.
        in_specs=[
            pl.BlockSpec(memory_space=pltpu.MemorySpace.VMEM),
            pl.BlockSpec(memory_space=pltpu.MemorySpace.VMEM),
            pl.BlockSpec(memory_space=pltpu.MemorySpace.VMEM),
        ],
        out_specs=pl.BlockSpec(memory_space=pltpu.MemorySpace.VMEM),
    )(x_p, w_p, c_p)

    return out_p[:BATCH, :OUT_FEATURES]


m_forward_jit = jax.jit(m_forward)


if __name__ == "__main__":
    key = jax.random.PRNGKey(0)
    kx, kp, kw, kb = jax.random.split(key, 4)

    # Deterministic small inputs matching the module's shapes.
    x = jax.random.uniform(kx, (BATCH, IN_FEATURES), jnp.float32)
    param = jax.random.uniform(kp, (BATCH, IN_FEATURES), jnp.float32)
    weight = jax.random.uniform(
        kw, (OUT_FEATURES, IN_FEATURES), jnp.float32, minval=-0.5, maxval=0.5
    )
    bias = jax.random.uniform(kb, (OUT_FEATURES,), jnp.float32, minval=-0.5, maxval=0.5)

    out = jax.block_until_ready(m_forward_jit(x, param, weight, bias))

    # Reference (plain JAX) check of forward semantics.
    ref = jnp.clip((x + param) @ weight.T + bias[None, :], 0.0, 1.0)
    assert out.shape == (BATCH, OUT_FEATURES), out.shape
    assert jnp.allclose(out, ref, atol=1e-6, rtol=1e-6), (out, ref)

    print("KERNEL_OK")
</pallas_src>

<mosaic_0001>
module attributes {stable_mosaic.version = 11 : i64} {
  func.func @m_kernel(%arg0: memref<8x128xf32, #tpu.memory_space<vmem>>, %arg1: memref<8x128xf32, #tpu.memory_space<vmem>>, %arg2: memref<8x128xf32, #tpu.memory_space<vmem>>, %arg3: memref<8x128xf32, #tpu.memory_space<vmem>>) attributes {dimension_semantics = [], scalar_prefetch = 0 : i64, scratch_operands = 0 : i64, tpu.core_type = #tpu.core_type<tc>} {
    %c0 = arith.constant 0 : index
    %c0_0 = arith.constant 0 : index
    %0 = vector.load %arg0[%c0, %c0_0] : memref<8x128xf32, #tpu.memory_space<vmem>>, vector<8x128xf32>
    %c0_1 = arith.constant 0 : index
    %c0_2 = arith.constant 0 : index
    %1 = vector.load %arg1[%c0_1, %c0_2] : memref<8x128xf32, #tpu.memory_space<vmem>>, vector<8x128xf32>
    %c0_3 = arith.constant 0 : index
    %c0_4 = arith.constant 0 : index
    %2 = vector.load %arg2[%c0_3, %c0_4] : memref<8x128xf32, #tpu.memory_space<vmem>>, vector<8x128xf32>
    %3 = vector.extract_strided_slice %0 {offsets = [0, 0], sizes = [8, 1], strides = [1, 1]} : vector<8x128xf32> to vector<8x1xf32>
    %4 = vector.extract_strided_slice %1 {offsets = [0, 0], sizes = [1, 128], strides = [1, 1]} : vector<8x128xf32> to vector<1x128xf32>
    %5 = vector.broadcast %3 : vector<8x1xf32> to vector<8x128xf32>
    %6 = vector.broadcast %4 : vector<1x128xf32> to vector<8x128xf32>
    %7 = arith.mulf %5, %6 : vector<8x128xf32>
    %8 = arith.addf %2, %7 : vector<8x128xf32>
    %9 = vector.extract_strided_slice %0 {offsets = [0, 1], sizes = [8, 1], strides = [1, 1]} : vector<8x128xf32> to vector<8x1xf32>
    %10 = vector.extract_strided_slice %1 {offsets = [1, 0], sizes = [1, 128], strides = [1, 1]} : vector<8x128xf32> to vector<1x128xf32>
    %11 = vector.broadcast %9 : vector<8x1xf32> to vector<8x128xf32>
    %12 = vector.broadcast %10 : vector<1x128xf32> to vector<8x128xf32>
    %13 = arith.mulf %11, %12 : vector<8x128xf32>
    %14 = arith.addf %8, %13 : vector<8x128xf32>
    %15 = vector.extract_strided_slice %0 {offsets = [0, 2], sizes = [8, 1], strides = [1, 1]} : vector<8x128xf32> to vector<8x1xf32>
    %16 = vector.extract_strided_slice %1 {offsets = [2, 0], sizes = [1, 128], strides = [1, 1]} : vector<8x128xf32> to vector<1x128xf32>
    %17 = vector.broadcast %15 : vector<8x1xf32> to vector<8x128xf32>
    %18 = vector.broadcast %16 : vector<1x128xf32> to vector<8x128xf32>
    %19 = arith.mulf %17, %18 : vector<8x128xf32>
    %20 = arith.addf %14, %19 : vector<8x128xf32>
    %21 = vector.extract_strided_slice %0 {offsets = [0, 3], sizes = [8, 1], strides = [1, 1]} : vector<8x128xf32> to vector<8x1xf32>
    %22 = vector.extract_strided_slice %1 {offsets = [3, 0], sizes = [1, 128], strides = [1, 1]} : vector<8x128xf32> to vector<1x128xf32>
    %23 = vector.broadcast %21 : vector<8x1xf32> to vector<8x128xf32>
    %24 = vector.broadcast %22 : vector<1x128xf32> to vector<8x128xf32>
    %25 = arith.mulf %23, %24 : vector<8x128xf32>
    %26 = arith.addf %20, %25 : vector<8x128xf32>
    %cst = arith.constant 0.000000e+00 : f32
    %27 = vector.broadcast %cst : f32 to vector<8x128xf32>
    %28 = arith.maximumf %26, %27 : vector<8x128xf32>
    %cst_5 = arith.constant 1.000000e+00 : f32
    %29 = vector.broadcast %cst_5 : f32 to vector<8x128xf32>
    %30 = arith.minimumf %28, %29 : vector<8x128xf32>
    %c0_6 = arith.constant 0 : index
    %c0_7 = arith.constant 0 : index
    %31 = vector.load %arg3[%c0_6, %c0_7] : memref<8x128xf32, #tpu.memory_space<vmem>>, vector<8x128xf32>
    tpu.vector_store %arg3[%c0_6, %c0_7], %30 {strides = array<i32>} : memref<8x128xf32, #tpu.memory_space<vmem>>, vector<8x128xf32>,
    return
  }
}

</mosaic_0001>

<bundles_post_ra>
// kernel: m_forward.1
= control target key start
LH: loop header
LB: loop body
LE: loop exit
PB: predicated region body
PF: predicated region fallthrough
CT: control target
= control target key end

     0   :  { %v74_v0 = vmov 0   ;;  %v75_v2 = vmov 2   ;;  %v76_v3 = vmov 1   ;;  %v77_v4 = vmov 3   ;;  %s110_s0 = inlined_call_operand.vmem [shape: f32[8,128], index: 0, kind: input, shape index: {}]   ;;  %s111_s1 = inlined_call_operand.vmem [shape: f32[8,128], index: 1, kind: input, shape index: {}]   ;;  %s112_s2 = inlined_call_operand.vmem [shape: f32[8,128], index: 2, kind: input, shape index: {}]   ;;  %s113_s3 = inlined_call_operand.vmem [shape: f32[8,128], index: 3, kind: output, shape index: {}]  }
   0x1   :  { %69 = vset.pattern.permute.xlu0 %v74_v0  ;;  %v14_v1 = vld [vmem:[%s110_s0] sm:$0xff]  ;;  %71 = vset.pattern.permute.xlu1 %v75_v2  ;;  %v22_v5 = vlaneseq }
   0x2   :  { %19 = vperm.xlu0 %69, %v14_v1   ;;  %39 = vperm.xlu1 %71, %v14_v1   ;;  %v15_v8 = vld [vmem:[%s111_s1] sm:$0xff] }
   0x3   :  { %v23_v6 = vshrl.u32 %v22_v5, 7  ;;  %v16_v17 = vld [vmem:[%s112_s2] sm:$0xff] }
   0x5   :  { %v24_v7 = vsub.s32 0, %v23_v6  ;;  %v34_v10 = vsub.s32 1, %v23_v6  ;;  %v44_v12 = vsub.s32 2, %v23_v6  ;;  %v54_v14 = vsub.s32 3, %v23_v6 }
   0x6   :  { %70 = vset.pattern.permute.xlu0 %v76_v3  ;;  %72 = vset.pattern.permute.xlu1 %v77_v4 }
   0x7   :  { %29 = vperm.xlu0 %70, %v14_v1   ;;  %49 = vperm.xlu1 %72, %v14_v1   ;;  %v25_v9 = vrot.slane %v15_v8, %v24_v7  ;;  %v35_v16 = vrot.slane %v15_v8, %v34_v10  ;;  %v45_v18 = vrot.slane %v15_v8, %v44_v12 }
   0x8   :  { %v55_v19 = vrot.slane %v15_v8, %v54_v14 }
   0xb   :  { %73 = vset.pattern.permute.xlu0 %v77_v4 }
  0x7d   :  { %v20_v11 = vpop.permute.xlu0 %19  ;;  %v40_v13 = vpop.permute.xlu1 %39 }
  0x7e   :  { %v26_v15 = vmul.f32 %v25_v9, %v20_v11  ;;  %v46_v24 = vmul.f32 %v45_v18, %v40_v13 }
  0x80   :  { %v27_v22 = vadd.f32 %v26_v15, %v16_v17 }
  0x82   :  { %v30_v20 = vpop.permute.xlu0 %29  ;;  %v50_v21 = vpop.permute.xlu1 %49 }
  0x83   :  { %v36_v23 = vmul.f32 %v35_v16, %v30_v20  ;;  %v56_v26 = vmul.f32 %v55_v19, %v50_v21 }
  0x85   :  { %v37_v25 = vadd.f32 %v36_v23, %v27_v22 }
  0x87   :  { %v47_v27 = vadd.f32 %v46_v24, %v37_v25 }
  0x89   :  { %v57_v28 = vadd.f32 %v56_v26, %v47_v27 }
  0x8b   :  { %v58_v29 = vmax.f32 %v57_v28, 0.0 }
  0x8d   :  { %v59_v30 = vmin.f32 %v58_v29, 1.0 }
  0x8f   :  { %60 = vst [vmem:[%s113_s3] sm:$0xff] %v59_v30 }

</bundles_post_ra>
